<compile_context>
chip_gen: v7x
topology: tpu7x:2x2x1
jax: 0.10.0
libtpu: 0.0.40
codegen_flags: <defaults>
</compile_context>

<pallas_src>
import functools

import jax
import jax.numpy as jnp
from jax import lax
from jax.experimental import pallas as pl
from jax.experimental.pallas import tpu as pltpu


def _h2n_conv_kernel(a_ref, x_ref, w_ref, b_ref, o_ref, *, norm):
    # a_ref : (bb, N, N)   x_ref : (bb, N, Fin)
    # w_ref : (Fin, Fout)  b_ref : (1, Fout)     o_ref : (bb, N, Fout)
    W = w_ref[...]         # resident across all grid steps (constant index_map)
    bvec = b_ref[...].astype(jnp.float32)          # (1, Fout)
    bb = a_ref.shape[0]

    # Static (trace-time) unroll over the small per-step batch block; each
    # iteration is the proven 2-D path (N, N) x (N, Fin).
    for i in range(bb):
        A = a_ref[i]       # (N, N)
        x = x_ref[i]       # (N, Fin)

        if norm:
            n = A.shape[-1]
            ones = jnp.ones((n, 1), dtype=A.dtype)
            # col_l1[j] = sum_i |A[i, j]|, produced directly in (N, 1)
            # orientation (contraction over A's row axis on the MXU, no
            # lane->sublane transpose).
            col_l1 = lax.dot_general(
                jnp.abs(A), ones,
                dimension_numbers=(((0,), (0,)), ((), ())),
                preferred_element_type=jnp.float32)                  # (N, 1)
            col_l1 = jnp.maximum(col_l1, 1e-12)                      # F.normalize eps
            inv = pl.reciprocal(col_l1, approx=True)                 # EUP slot
            inv = inv * (2.0 - col_l1 * inv)                         # Newton -> ~f32 exact
            # A_norm @ (x W^T + b) == (A @ (x*inv)) W^T + (A @ inv) b^T
            xi = (x.astype(jnp.float32) * inv).astype(A.dtype)       # (N, Fin)
            bias_w = jnp.dot(A, inv.astype(A.dtype),
                             preferred_element_type=jnp.float32)     # (N, 1)
        else:
            xi = x
            # A @ ones == row sums of A (cheap XLU lane reduce).
            bias_w = jnp.sum(A.astype(jnp.float32), axis=-1, keepdims=True)

        # Aggregate before projecting: N x N contraction runs over Fin lanes,
        # the (N, Fin) intermediate stays in VMEM.
        agg = jnp.dot(A, xi, preferred_element_type=jnp.float32)     # (N, Fin)
        out = jnp.dot(agg.astype(W.dtype), W,
                      preferred_element_type=jnp.float32)            # (N, Fout)
        out = out + bias_w * bvec
        o_ref[i] = jnp.maximum(out, 0.0).astype(o_ref.dtype)


def hyperedge_to_node_conv(A, x, W, b, norm=False):
    """Forward pass of Hyperedge_to_node_conv.

    A: [B, N, N], x: [B, N, Fin], W: [Fout, Fin], b: [Fout]  ->  [B, N, Fout]
    """
    B, N, _ = A.shape
    Fin = x.shape[-1]
    Fout = W.shape[0]

    Wt = W.T                     # (Fin, Fout), resident in VMEM
    b2 = b.reshape(1, Fout)      # (1, Fout),  resident in VMEM

    # Chip-aware VMEM budget (64 MiB per TC on v7x, 128 MiB on v5e/v6e).
    try:
        vmem_cap = int(pltpu.get_tpu_info().vmem_capacity_bytes)
    except Exception:
        vmem_cap = 64 * 1024 * 1024
    vmem_limit = max(8 * 1024 * 1024, int(0.7 * vmem_cap))

    # Batch block: amortize per-step overhead at small N, stay well inside the
    # VMEM budget (double-buffered blocks + in-kernel temps), and keep >= 2
    # grid steps when B >= 2 so both v7x TensorCores get work.
    bytes_per_batch = 4 * (N * N + N * Fin + N * Fout)
    bb = max(1, min(B, vmem_limit // max(1, 6 * bytes_per_batch)))
    if B >= 2:
        bb = min(bb, max(1, B // 2))
    while B % bb != 0:           # keep exact tiling of the batch axis
        bb -= 1
    grid = (B // bb,)

    kernel = functools.partial(_h2n_conv_kernel, norm=norm)

    flops_per_b = 2 * N * N * Fin + 2 * N * Fin * Fout + 2 * N * N
    if norm:
        flops_per_b += 3 * N * N
    cost = pl.CostEstimate(
        flops=int(B * flops_per_b),
        transcendentals=int(B * N if norm else 0),
        bytes_accessed=int(4 * B * (N * N + N * Fin + N * Fout)
                           + 4 * (Fin * Fout + Fout)))

    out = pl.pallas_call(
        kernel,
        out_shape=jax.ShapeDtypeStruct((B, N, Fout), x.dtype),
        grid_spec=pltpu.PrefetchScalarGridSpec(
            num_scalar_prefetch=0,
            grid=grid,
            in_specs=[
                pl.BlockSpec((bb, N, N), lambda i: (i, 0, 0)),
                pl.BlockSpec((bb, N, Fin), lambda i: (i, 0, 0)),
                pl.BlockSpec((Fin, Fout), lambda i: (0, 0)),   # resident W^T
                pl.BlockSpec((1, Fout), lambda i: (0, 0)),     # resident bias
            ],
            out_specs=pl.BlockSpec((bb, N, Fout), lambda i: (i, 0, 0)),
        ),
        compiler_params=pltpu.CompilerParams(
            dimension_semantics=("parallel",),
            vmem_limit_bytes=vmem_limit,
        ),
        cost_estimate=cost,
    )(A, x, Wt, b2)

    return out


def _ref(A, x, W, b, norm):
    # Pure-JAX reference matching the PyTorch module.
    if norm:
        col_l1 = jnp.maximum(jnp.sum(jnp.abs(A), axis=-2, keepdims=True), 1e-12)
        A = A / col_l1
    ax = jnp.einsum('bnf,of->bno', x, W) + b
    return jnp.maximum(jnp.einsum('bnm,bmo->bno', A, ax), 0.0)


if __name__ == "__main__":
    key = jax.random.PRNGKey(0)
    B, N, Fin, Fout = 2, 16, 8, 32

    ka, kx, kw, kb = jax.random.split(key, 4)
    A = jax.random.uniform(ka, (B, N, N), dtype=jnp.float32)
    x = jax.random.normal(kx, (B, N, Fin), dtype=jnp.float32)

    # nn.Linear-style init: U(-1/sqrt(Fin), 1/sqrt(Fin))
    bound = 1.0 / (Fin ** 0.5)
    W = jax.random.uniform(kw, (Fout, Fin), jnp.float32, -bound, bound)
    b = jax.random.uniform(kb, (Fout,), jnp.float32, -bound, bound)

    out_norm = jax.block_until_ready(hyperedge_to_node_conv(A, x, W, b, norm=True))
    out_raw = jax.block_until_ready(hyperedge_to_node_conv(A, x, W, b, norm=False))

    ref_norm = _ref(A, x, W, b, True)
    ref_raw = _ref(A, x, W, b, False)

    assert out_norm.shape == (B, N, Fout)
    assert out_raw.shape == (B, N, Fout)
    assert jnp.allclose(out_norm, ref_norm, atol=1e-4, rtol=1e-3)
    assert jnp.allclose(out_raw, ref_raw, atol=1e-4, rtol=1e-3)

    print("KERNEL_OK")
</pallas_src>

<mosaic_0001>
module attributes {stable_mosaic.version = 11 : i64} {
  func.func @_h2n_conv_kernel(%arg0: i32, %arg1: memref<1x16x16xf32, #tpu.memory_space<vmem>>, %arg2: memref<1x16x8xf32, #tpu.memory_space<vmem>>, %arg3: memref<8x32xf32, #tpu.memory_space<vmem>>, %arg4: memref<1x32xf32, #tpu.memory_space<vmem>>, %arg5: memref<1x16x32xf32, #tpu.memory_space<vmem>>) attributes {dimension_semantics = [#tpu.dimension_semantics<parallel>], iteration_bounds = array<i64: 2>, scalar_prefetch = 0 : i64, scratch_operands = 0 : i64, tpu.core_type = #tpu.core_type<tc>, window_params = [{transform_indices = @transform_0, window_bounds = array<i64: 1, 16, 16>}, {transform_indices = @transform_1, window_bounds = array<i64: 1, 16, 8>}, {pipeline_mode = #tpu.pipeline_mode<synchronous>, transform_indices = @transform_2, window_bounds = array<i64: 8, 32>}, {pipeline_mode = #tpu.pipeline_mode<synchronous>, transform_indices = @transform_3, window_bounds = array<i64: 1, 32>}, {transform_indices = @transform_4, window_bounds = array<i64: 1, 16, 32>}]} {
    %c0 = arith.constant 0 : index
    %c0_0 = arith.constant 0 : index
    %0 = vector.load %arg3[%c0, %c0_0] : memref<8x32xf32, #tpu.memory_space<vmem>>, vector<8x32xf32>
    %c0_1 = arith.constant 0 : index
    %c0_2 = arith.constant 0 : index
    %1 = vector.load %arg4[%c0_1, %c0_2] : memref<1x32xf32, #tpu.memory_space<vmem>>, vector<1x32xf32>
    %c0_3 = arith.constant 0 : index
    %c0_4 = arith.constant 0 : index
    %c0_5 = arith.constant 0 : index
    %2 = vector.load %arg1[%c0_3, %c0_4, %c0_5] : memref<1x16x16xf32, #tpu.memory_space<vmem>>, vector<1x16x16xf32>
    %3 = vector.shape_cast %2 : vector<1x16x16xf32> to vector<16x16xf32>
    %c0_6 = arith.constant 0 : index
    %c0_7 = arith.constant 0 : index
    %c0_8 = arith.constant 0 : index
    %4 = vector.load %arg2[%c0_6, %c0_7, %c0_8] : memref<1x16x8xf32, #tpu.memory_space<vmem>>, vector<1x16x8xf32>
    %5 = vector.shape_cast %4 : vector<1x16x8xf32> to vector<16x8xf32>
    %cst = arith.constant 1.000000e+00 : f32
    %6 = vector.broadcast %cst : f32 to vector<16x1xf32>
    %7 = math.absf %3 : vector<16x16xf32>
    %cst_9 = arith.constant dense<0.000000e+00> : vector<16x1xf32>
    %8 = tpu.matmul %7, %6, %cst_9 {dimension_numbers = #tpu.dot_dimension_numbers<[0], [0], [1], [1], [0, 1, 1, 1], [], []>} : vector<16x16xf32>, vector<16x1xf32>, vector<16x1xf32> -> vector<16x1xf32>
    %cst_10 = arith.constant 9.99999996E-13 : f32
    %9 = vector.broadcast %cst_10 : f32 to vector<16x1xf32>
    %10 = arith.maximumf %8, %9 : vector<16x1xf32>
    %11 = tpu.reciprocal %10 {approx = true} : vector<16x1xf32> -> vector<16x1xf32>
    %12 = arith.mulf %10, %11 : vector<16x1xf32>
    %cst_11 = arith.constant 2.000000e+00 : f32
    %13 = vector.broadcast %cst_11 : f32 to vector<16x1xf32>
    %14 = arith.subf %13, %12 : vector<16x1xf32>
    %15 = arith.mulf %11, %14 : vector<16x1xf32>
    %16 = vector.broadcast %15 : vector<16x1xf32> to vector<16x8xf32>
    %17 = arith.mulf %5, %16 : vector<16x8xf32>
    %cst_12 = arith.constant dense<0.000000e+00> : vector<16x1xf32>
    %18 = tpu.matmul %3, %15, %cst_12 {dimension_numbers = #tpu.dot_dimension_numbers<[1], [0], [0], [1], [0, 0, 1, 1], [], []>} : vector<16x16xf32>, vector<16x1xf32>, vector<16x1xf32> -> vector<16x1xf32>
    %cst_13 = arith.constant dense<0.000000e+00> : vector<16x8xf32>
    %19 = tpu.matmul %3, %17, %cst_13 {dimension_numbers = #tpu.dot_dimension_numbers<[1], [0], [0], [1], [0, 0, 1, 1], [], []>} : vector<16x16xf32>, vector<16x8xf32>, vector<16x8xf32> -> vector<16x8xf32>
    %cst_14 = arith.constant dense<0.000000e+00> : vector<16x32xf32>
    %20 = tpu.matmul %19, %0, %cst_14 {dimension_numbers = #tpu.dot_dimension_numbers<[1], [0], [0], [1], [0, 0, 1, 1], [], []>} : vector<16x8xf32>, vector<8x32xf32>, vector<16x32xf32> -> vector<16x32xf32>
    %21 = vector.broadcast %18 : vector<16x1xf32> to vector<16x32xf32>
    %22 = vector.broadcast %1 : vector<1x32xf32> to vector<16x32xf32>
    %23 = arith.mulf %21, %22 : vector<16x32xf32>
    %24 = arith.addf %20, %23 : vector<16x32xf32>
    %cst_15 = arith.constant 0.000000e+00 : f32
    %25 = vector.broadcast %cst_15 : f32 to vector<16x32xf32>
    %26 = arith.maximumf %24, %25 : vector<16x32xf32>
    %c0_16 = arith.constant 0 : index
    %c0_17 = arith.constant 0 : index
    %c0_18 = arith.constant 0 : index
    %27 = vector.load %arg5[%c0_16, %c0_17, %c0_18] : memref<1x16x32xf32, #tpu.memory_space<vmem>>, vector<1x16x32xf32>
    %28 = vector.shape_cast %27 : vector<1x16x32xf32> to vector<16x32xf32>
    %29 = vector.shape_cast %26 : vector<16x32xf32> to vector<1x16x32xf32>
    tpu.vector_store %arg5[%c0_16, %c0_17, %c0_18], %29 {strides = array<i32>} : memref<1x16x32xf32, #tpu.memory_space<vmem>>, vector<1x16x32xf32>,
    return
  }
  func.func @transform_0(%arg0: i32) -> (i32, i32, i32) {
    %c0_i32 = arith.constant 0 : i32
    %c0_i32_0 = arith.constant 0 : i32
    %c0_i32_1 = arith.constant 0 : i32
    return %arg0, %c0_i32, %c0_i32_0 : i32, i32, i32
  }
  func.func @transform_1(%arg0: i32) -> (i32, i32, i32) {
    %c0_i32 = arith.constant 0 : i32
    %c0_i32_0 = arith.constant 0 : i32
    %c0_i32_1 = arith.constant 0 : i32
    return %arg0, %c0_i32, %c0_i32_0 : i32, i32, i32
  }
  func.func @transform_2(%arg0: i32) -> (i32, i32) {
    %c0_i32 = arith.constant 0 : i32
    %c0_i32_0 = arith.constant 0 : i32
    %c0_i32_1 = arith.constant 0 : i32
    return %c0_i32, %c0_i32_0 : i32, i32
  }
  func.func @transform_3(%arg0: i32) -> (i32, i32) {
    %c0_i32 = arith.constant 0 : i32
    %c0_i32_0 = arith.constant 0 : i32
    %c0_i32_1 = arith.constant 0 : i32
    return %c0_i32, %c0_i32_0 : i32, i32
  }
  func.func @transform_4(%arg0: i32) -> (i32, i32, i32) {
    %c0_i32 = arith.constant 0 : i32
    %c0_i32_0 = arith.constant 0 : i32
    %c0_i32_1 = arith.constant 0 : i32
    return %arg0, %c0_i32, %c0_i32_0 : i32, i32, i32
  }
}

</mosaic_0001>

<bundles_post_ra>
// kernel: tpu_custom_call.1
= control target key start
LH: loop header
LB: loop body
LE: loop exit
PB: predicated region body
PF: predicated region fallthrough
CT: control target
= control target key end

     0   :  { %9 = vsyncpa [#allocation3], 0  ;;  %s1055_s0 = inlined_call_operand.vmem [shape: f32[2,16,16], index: 0, kind: input, shape index: {}]   ;;  %s1056_s1 = inlined_call_operand.vmem [shape: f32[2,16,8], index: 1, kind: input, shape index: {}]   ;;  %s1057_s2 = inlined_call_operand.vmem [shape: f32[8,32], index: 2, kind: input, shape index: {}]   ;;  %s1058_s3 = inlined_call_operand.vmem [shape: f32[1,32], index: 3, kind: input, shape index: {}]   ;;  %s1059_s4 = inlined_call_operand.hbm [shape: f32[2,16,32], index: 4, kind: output, shape index: {}]  }
   0x1   :  { %11 = vsyncpa [#allocation3 + $0x1], 0  ;;  %s930_s15 = smov 0   ;;  %s932_s16 = smov 0  }
   0x2   :  { %s934_s17 = smov 0   ;;  %s936_s18 = smov 0  }
   0x3 LB: > { %s951_s19 = sadd.s32 4294967295, %s898_s18   ;;  %s709_s20 = sadd.s32 4294967294, %s898_s18   ;;  %s898_s18 = sphi %s936_s18, %s1065_s18   ;;  %s894_s17 = sphi %s934_s17, %s1064_s17   ;;  %s890_s16 = sphi %s932_s16, %s1063_s16   ;;  %s886_s15 = sphi %s930_s15, %s1062_s15  }
   0x4   : > { %s955_s21 = sadd.s32 1, %s898_s18   ;;  %s118_s22 = sadd.s32 1, %s894_s17 }
   0x5   : > { %s115_s23 = ssub.s32 %s898_s18, %s955_s21  ;;  %p128_p0 = scmp.ne.s32.totalorder %s894_s17, %s890_s16 }
   0x6   : > { %p116_p1 = scmp.eq.s32.totalorder %s115_s23, 0  ;;  %p129_p2 = scmp.eq.s32.totalorder %s951_s19, 1 }
   0x7   : > { %p134_p3 = scmp.ne.s32.totalorder %s890_s16, %s886_s15  ;;  %p135_p4 = scmp.eq.s32.totalorder %s709_s20, 1 }
   0x8   : > { %s966_s24 = scalar_select %p116_p1, %s894_s17, %s118_s22  }
   0x9   : > { %p968_p5 = por %p129_p2, %p128_p0  ;;  %p972_p6 = por %p135_p4, %p134_p3 }
   0xa   : > { %p712_p7 = scmp.ge.s32.totalorder %s898_s18, 1  ;;  %p175_p8 = scmp.lt.s32.totalorder %s898_s18, 3 }
   0xc   : > { %p176_p9 = pnand %p712_p7, %p175_p8 }
   0xd   : > { %p206_p10 = scmp.lt.s32.totalorder (!%p176_p9), %s951_s19, 1  ;;  %vm256_vm0 = vcmask (!%p176_p9), 130048   ;;  %v900_v4 = vmov (!%p176_p9), 1.0|1.0   ;;  %v901_v7 = vmov (!%p176_p9), 0   ;;  %v216_v29 = vld [vmem:[%s1057_s2] sm:$0xff] (!%p176_p9) }
   0xe   : > { %179 = sbr.rel (%p176_p9) target bundleno = 979 (0x3d3), region = 36  ;;  %776 = vmatprep.subr.bf16.mxu0 (!%p176_p9), %v900_v4  ;;  %830 = vset.pattern.permute.xlu1 (!%p176_p9), %v901_v7  ;;  %vm534_vm1 = vcmask (!%p176_p9), 64512   ;;  %s203_s11 = sand.u32 (!%p176_p9), 1, %s890_s16   ;;  %v724_v34 = vld [vmem:[%s1058_s3] ss:$0 sm:$0xff] (!%p176_p9)  ;;  %vm618_vm2 = vcmask (!%p176_p9), 261120  }
   0xf   : > { %777 = vmatpush3.bf16.msra.mxu0 (!%p176_p9), %v900_v4  ;;  %s713_s12 = sshll.u32 (!%p176_p9), %s203_s11, 4  ;;  %s734_s23 = sshll.u32 (!%p176_p9), %s951_s19, 8 }
  0x10   : > { %s205_s20 = scalar_lea.vmem (!%p176_p9), [#allocation2], %s713_s12  ;;  %s1012_s29 = scalar_lea.hbm (!%p176_p9), %s1059_s4, %s734_s23 }
  0x11   : > { %s635_s22 = sshll.u32 (!%p176_p9), %s205_s20, 4  ;;  %s1014_s30 = scalar_lea.sflag (!%p176_p9), [#allocation3], %s203_s11  ;;  %s1007_s22 = int_to_ptr.vmem [resolvable:$true] %s635_s22 }
  0x15   : > { %s980_s27 = scalar_select %p206_p10, %s951_s19, 1 }
  0x16   : > { %s836_s19 = scalar_lea.vmem %s1007_s22, 256 }
  0x17   : > { %s732_s28 = sshll.u32 %s980_s27, 4  ;;  %p837_p11 = scmp.ne.s32.totalorder %s1007_s22, %s836_s19 }
  0x18   : > { %s210_s5 = scalar_lea.vmem %s1055_s0, %s732_s28  ;;  %s215_s8 = scalar_lea.vmem %s1056_s1, %s732_s28 }
  0x19   : > { %v218_v0 = vld [vmem:[%s210_s5] sm:$0xff]  ;;  %v219_v1 = vld [vmem:[%s210_s5 + $0x8] sm:$0xff]  ;;  %p838_p12 = pnand %p837_p11, %p968_p5  ;;  %s902_s5 = smov [#allocation2]  }
  0x1a   : > { %v222_v2 = vand.u32 2147483647, %v218_v0  ;;  %v223_v3 = vand.u32 2147483647, %v219_v1  ;;  %761 = vmatprep.mubr.msk.f32.mxu1 %vm256_vm0, %v218_v0  ;;  %v220_v22 = vld [vmem:[%s215_s8] sm:$0xff]  ;;  %v221_v23 = vld [vmem:[%s215_s8 + $0x8] sm:$0xff] }
  0x1b   : > { %p839_p13 = pneg %p838_p12  ;;  %s840_s6 = sshll.u32 %s902_s5, 4  ;;  %s841_s6 = int_to_ptr.vmem [resolvable:$false] %s840_s6 }
  0x1c   : > { %224 = vxpose.xlu0.b32.start [1/2] (short) (narrow) %v222_v2, 16  ;;  %s842_s7 = scalar_lea.vmem %s841_s6, 512  ;;  %p843_p0 = scmp.lt.s32.totalorder %s1007_s22, %s841_s6 }
  0x1d   : > { %p844_p1 = scmp.lt.s32.totalorder %s842_s7, %s836_s19 }
  0x1f   : > { %p845_p2 = por %p844_p1, %p843_p0 }
  0x20   : > { %225 = vxpose.xlu0.b32.end [2/2] (short) (narrow) %v223_v3, 16 }
  0x21   : > { %p846_p3 = pnand %p845_p2, %p839_p13 }
  0x49   : > { %831 = vset.pattern.permute.xlu0 %v901_v7 }
  0x9c   : > { %v240_v5 = vpop.trf.xlu0 }
  0x9d   : > { %754 = vmatprep.mubr.msk.f32.mxu0 %vm256_vm0, %v240_v5 }
  0xa0   : > { %v241_v6 = vpop.trf.xlu0 }
  0xa1   : > { %755 = vmatmul.mubr.msk.f32.vlgmr.msra.gmra.mrb[0].mxu0 %vm256_vm0, %v241_v6 }
  0xa2   : > { %768 = vmatprep.mubr.msk.f32.mxu0 %vm256_vm0, %v218_v0 }
 0x174   : > { %v756_v8 = vpop.f32.mrb[0].mxu0 }
 0x175   : > { %v339_v9 = vmax.f32 %v756_v8, 1e-12  ;;  %v329_v10 = vpop.f32.mrb[1].mxu0 }
 0x176   : > { %v338_v11 = vmax.f32 %v329_v10, 1e-12 }
 0x177   : > { %832 = vrcp.f32 %v339_v9 }
 0x178   : > { %834 = vrcp.f32 %v338_v11 }
 0x181   : > { %v833_v12 = vpop.eup %832 }
 0x182   : > { %v835_v13 = vpop.eup %834  ;;  %v343_v14 = vmul.f32 %v833_v12, %v339_v9 }
 0x183   : > { %v342_v15 = vmul.f32 %v835_v13, %v338_v11 }
 0x184   : > { %v345_v16 = vsub.f32 2.0, %v343_v14 }
 0x185   : > { %v344_v17 = vsub.f32 2.0, %v342_v15 }
 0x186   : > { %v347_v18 = vmul.f32 %v833_v12, %v345_v16 }
 0x187   : > { %v346_v19 = vmul.f32 %v835_v13, %v344_v17 }
 0x189   : > { %350 = vperm.xlu1 %830, %v346_v19   ;;  %v778_v20 = vpack.c.bf16 %v347_v18, %v346_v19 }
 0x18b   : > { %779 = vmatprep.subr.bf16.mxu1 %v778_v20 }
 0x18c   : > { %781 = vmatpush3.bf16.msra.mxu1 %v778_v20 }
 0x18d   : > { %355 = vperm.xlu1 %830, %v347_v18   ;;  %771 = vmatprep.subr.mxu1 %v216_v29 }
 0x18f   : > { %762 = vmatmul.mubr.msk.f32.vlgmr.msra.gmra.mrb[0].mxu1 %vm256_vm0, %v219_v1 }
 0x190   : > { %772 = vmatpush3.msra.mxu1 %v216_v29 }
 0x208   : > { %v351_v21 = vpop.permute.xlu1 %350 }
 0x209   : > { %v358_v25 = vmul.f32 %v351_v21, %v220_v22 }
 0x20c   : > { %v356_v24 = vpop.permute.xlu1 %355 }
 0x20d   : > { %v359_v26 = vmul.f32 %v356_v24, %v221_v23 }
 0x20f   : > { %v782_v27 = vpack.c.bf16 %v359_v26, %v358_v25 }
 0x211   : > { %783 = vmatprep.subr.bf16.mxu0 %v782_v27 }
 0x212   : > { %785 = vmatpush3.bf16.msra.mxu0 %v782_v27 }
 0x215   : > { %769 = vmatmul.mubr.msk.f32.vlgmr.msra.gmra.mrb[2].mxu0 %vm256_vm0, %v219_v1 }
 0x262   : > { %v763_v28 = vpop.f32.mrb[0].mxu1 }
 0x263   : > { %523 = vperm.xlu1 %830, %v763_v28   ;;  %v432_v30 = vpop.f32.mrb[1].mxu1 }
 0x264   : > { %518 = vperm.xlu0 %831, %v432_v30  }
 0x2e2   : > { %v524_v35 = vpop.permute.xlu1 %523 }
 0x2e3   : > { %v519_v33 = vpop.permute.xlu0 %518  ;;  %v533_v37 = vmul.f32 %v724_v34, %v524_v35 }
 0x2e4   : > { %v532_v36 = vmul.f32 %v724_v34, %v519_v33 }
 0x2e8   : > { %v770_v31 = vpop.f32.mrb[2].mxu0 }
 0x2e9   : > { %v507_v32 = vpop.f32.mrb[3].mxu0 }
 0x2ea   : > { %773 = vmatprep.mubr.msk.f32.mxu1 %vm534_vm1, %v507_v32 }
 0x2eb   : > { %774 = vmatmul.mubr.msk.f32.vlgmr.msra.gmra.mrb[2].mxu1 %vm534_vm1, %v770_v31 }
 0x3be   : > { %v775_v38 = vpop.f32.mrb[2].mxu1 }
 0x3bf   : > { %v613_v39 = vadd.f32 %v775_v38, %v533_v37  ;;  %v607_v40 = vpop.f32.mrb[3].mxu1 }
 0x3c0   : > { %v608_v41 = vadd.f32 %v607_v40, %v532_v36 }
 0x3c1   : > { %v617_v42 = vmax.f32 %v613_v39, 0.0 }
 0x3c2   : > { %v616_v43 = vmax.f32 %v608_v41, 0.0 }
 0x3c3   : > { %620 = vst.msk [vmem:[%s205_s20 + $0x8] sm:$0xff] %vm618_vm2, %v617_v42 }
 0x3c4   : > { %619 = vst.msk [vmem:[%s205_s20] sm:$0xff] %vm618_vm2, %v616_v43 }
 0x3c5   : > { %849 = shalt.err (!%p846_p3)
}
 0x3c6   : > { %s850_s8 = scalar_lea.hbm %s1012_s29, 256  ;;  %s854_s11 = scalar_lea.hbm %s1059_s4, 512 }
 0x3c7   : > { %p851_p4 = scmp.ne.s32.totalorder %s1012_s29, %s850_s8  ;;  %p855_p9 = scmp.lt.u32.totalorder %s1012_s29, %s1059_s4 }
 0x3c8   : > { %p856_p10 = scmp.lt.u32.totalorder %s854_s11, %s850_s8  ;;  %p858_p12 = scmp.lt.u32.totalorder %s850_s8, %s1012_s29 }
 0x3c9   : > { %p852_p7 = pnand %p851_p4, %p968_p5 }
 0x3ca   : > { %p857_p11 = por %p856_p10, %p855_p9 }
 0x3cb   : > { %p853_p8 = pneg %p852_p7 }
 0x3cc   : > { %p859_p13 = por %p858_p12, %p857_p11 }
 0x3ce   : > { %p860_p0 = pnand %p859_p13, %p853_p8 }
 0x3d0   : > { %863 = shalt.err (!%p860_p0)
}
 0x3d1   : > { %s903_s14 = smov 128   ;;  %s904_s20 = smov 8  }
 0x3d2   : > { %786 = dma.vmem_to_hbm [thread:$0]  (%p968_p5), %s1007_s22, 256, %s1012_s29, %s1014_s30, %s903_s14, %s903_s14, %s904_s20  }
 0x3d3 PF: > { %p792_p1 = scmp.ge.s32.totalorder %s898_s18, 2  ;;  %s650_s23 = sand.u32 1, %s886_s15  }
 0x3d4   : > { %s651_s27 = scalar_lea.sflag [#allocation3], %s650_s23 }
 0x3d5   : > { %p789_p2 = pnand %p792_p1, %p972_p6 }
 0x3d7   : > { %881 = dma.done.wait (!%p789_p2), %s651_s27, 256  }
 0x3d8   : > { %883 = vsyncadd (!%p789_p2), %s651_s27, 4294967040  ;;  %p14_p3 = scmp.ge.s32.totalorder %s955_s21, 4   ;;  %s1062_s15 = smov %s890_s16 }
 0x3d9   : > { %s1063_s16 = smov %s894_s17  ;;  %s1064_s17 = smov %s966_s24 }
 0x3da   : > { %s1065_s18 = smov %s955_s21  ;;  %16 = sbr.rel (!%p14_p3) target bundleno = 3 (0x3), region = 74 }
 0x3e1   :  { %656 = vsyncpa [#allocation3], 1 }
 0x3e2   :  { %658 = vsyncpa [#allocation3 + $0x1], 1 }

</bundles_post_ra>
